<compile_context>
chip_gen: v5e
topology: v5e:2x2
jax: 0.10.0
libtpu: 0.0.40
codegen_flags: <defaults>
</compile_context>

<pallas_src>
import numpy as np
import jax
import jax.numpy as jnp
from jax import lax
from jax.experimental import pallas as pl
from jax.experimental.pallas import tpu as pltpu


# ---------------- parameter construction (mirrors the PyTorch __init__) ------

def dct_mat(size):
    return np.array(
        [[(np.sqrt(1.0 / size) if i == 0 else np.sqrt(2.0 / size))
          * np.cos((j + 0.5) * np.pi * i / size) for j in range(size)]
         for i in range(size)], dtype=np.float64)


def generate_filter(start, end, size):
    return np.array([[0.0 if i + j > end or i + j < start else 1.0
                      for j in range(size)] for i in range(size)],
                    dtype=np.float64)


def combined_grade_weights(ws, grade_N):
    """Fold the grade_N band filters, their 1/ft_num norms and the 2**i
    weights into a single (ws*ws,) weight vector (row-major vec ordering)."""
    gsum = np.zeros((ws, ws), np.float64)
    w = 1.0
    for i in range(grade_N):
        f = generate_filter(ws * 2.0 / grade_N * i,
                            ws * 2.0 / grade_N * (i + 1), ws)
        gsum += f * (w / float(f.sum()))
        w *= 2.0
    return gsum.reshape(-1)


# ---------------- Pallas grade kernel -----------------------------------------

def _make_grade_kernel(C, TL):
    """One grid step = TL patches x C channels, lane-concatenated.

    p_ref block: (wsq, C*TL) bf16 where lane c*TL + l holds vec(patch l) of
    channel c.  One (wsq,wsq)@(wsq,C*TL) MXU matmul = fused 2-D DCT of every
    patch in the tile, then grade_l = sum_k gsum[k]*log(|xd[k,l]|+1) summed
    over channels via static 128-aligned lane slices.  Only the (1, TL) grade
    row (4 B/patch) is written back."""
    def kernel(p_ref, tdct_ref, gsum_ref, grade_ref):
        xd = jnp.dot(tdct_ref[...], p_ref[...],
                     preferred_element_type=jnp.float32)        # (wsq, C*TL) f32
        # f32 log keeps v5e happy (no bf16 EUP/VPU there); on v6e/v7x a bf16
        # log path would be ~2x EUP throughput if this ever becomes the binder.
        la = jnp.log(jnp.abs(xd) + 1.0)
        v = jnp.sum(la * gsum_ref[...], axis=0, keepdims=True)  # (1, C*TL)
        acc = v[:, 0:TL]
        for c in range(1, C):                                   # static, tiny
            acc = acc + v[:, c * TL:(c + 1) * TL]
        grade_ref[...] = acc                                    # lane-dense
    return kernel


# ---------------- forward wrapper ---------------------------------------------

def dct_base_rec_forward(x, *, window_size=8, stride=4, output=16,
                         grade_N=6, level_fliter=(0,)):
    assert output % window_size == 0
    assert len(level_fliter) > 0
    # TODO(synk): only level_fliter=(0,) (level_N=1) is handled; the PyTorch
    # module can only construct that single band filter anyway.
    assert tuple(level_fliter) == (0,)

    ws = window_size
    wsq = ws * ws
    C, H, W = x.shape
    N = (output // ws) * (output // ws)
    level_N = len(level_fliter)

    # ---- deterministic parameters / fused transforms (host, float64) -------
    D = dct_mat(ws)
    level_filt = generate_filter(0, ws * 2, ws)                # level filter 0
    T_dct = np.kron(D, D)                                      # vec(DpD^T) = T @ vec(p)
    M_y = np.kron(D.T, D.T) @ np.diag(level_filt.reshape(-1)) @ T_dct
    gsum = combined_grade_weights(ws, grade_N)

    T_dct_bf = jnp.asarray(T_dct, dtype=jnp.bfloat16)          # (wsq, wsq)
    gsum_col = jnp.asarray(gsum.reshape(wsq, 1), dtype=jnp.float32)
    M_y_T = jnp.asarray(np.ascontiguousarray(M_y.T), dtype=jnp.float32)

    # ---- nn.Unfold (im2col) in kernel layout (C, wsq, L), columns=vec(patch)
    # TODO(synk): in-kernel streaming of raw image strips would cut another ~2x
    # of HBM traffic (pixels duplicated ws/stride times per axis here).
    nH = (H - ws) // stride + 1
    nW = (W - ws) // stride + 1
    L = nH * nW
    HI = (np.arange(ws)[:, None, None, None]
          + np.arange(nH)[None, None, :, None] * stride)       # (ws,1,nH,1)
    WI = (np.arange(ws)[None, :, None, None]
          + np.arange(nW)[None, None, None, :] * stride)       # (1,ws,1,nW)
    patches = x[:, HI, WI].reshape(C, wsq, L).astype(jnp.float32)

    # ---- adaptive lane tiling -----------------------------------------------
    TL_MAX = 1024
    n_tiles = max(1, -(-L // TL_MAX))
    if L > 128 and n_tiles < 2:
        n_tiles = 2                  # v7x: >=2 grid steps keeps both TCs busy
    per_tile = -(-L // n_tiles)
    TL = ((per_tile + 127) // 128) * 128      # lane tile, multiple of 128
    Lp = n_tiles * TL

    patches_p = patches if Lp == L else jnp.pad(
        patches, ((0, 0), (0, 0), (0, Lp - L)))
    # lane-concat channels per tile: grade_in[k, (t*C + c)*TL + l] =
    # patches[c, k, t*TL + l]; bf16 payload halves HBM bytes on the mem-bound
    # grade pass (MXU still accumulates in f32).
    grade_in = patches_p.reshape(C, wsq, n_tiles, TL)
    grade_in = jnp.transpose(grade_in, (1, 2, 0, 3)).reshape(
        wsq, n_tiles * C * TL)
    grade_in = grade_in.astype(jnp.bfloat16)

    grade_pad = pl.pallas_call(
        _make_grade_kernel(C, TL),
        out_shape=jax.ShapeDtypeStruct((1, Lp), jnp.float32),
        grid=(n_tiles,),
        in_specs=[
            pl.BlockSpec((wsq, C * TL), lambda i: (0, i)),
            pl.BlockSpec((wsq, wsq), lambda i: (0, 0)),
            pl.BlockSpec((wsq, 1), lambda i: (0, 0)),
        ],
        out_specs=pl.BlockSpec((1, TL), lambda i: (0, i)),
        compiler_params=pltpu.CompilerParams(
            dimension_semantics=("parallel",)),
    )(grade_in, T_dct_bf, gsum_col)

    grade = grade_pad[0, :L]                                    # (L,)

    # ---- selection: only the 2 smallest / 2 largest grades are needed ------
    # TODO(synk): tie-breaking on exactly equal grades may differ from the
    # stable torch.sort used by the reference module.
    k_sel = min(2, L)
    _, min_idx = lax.top_k(-grade, k_sel)
    _, max_idx = lax.top_k(grade, k_sel)
    n_sel = min(N, L)
    minmin_idx, maxmax_idx = min_idx[0], max_idx[0]
    if n_sel > 1:
        minmin_idx1, maxmax_idx1 = min_idx[1], max_idx[1]
    else:
        minmin_idx1, maxmax_idx1 = min_idx[0], max_idx[0]

    # ---- y = D^T @ (filt * (D p D^T)) @ D for the 4 selected patches only.
    # (4*C, wsq) @ (wsq, wsq) is trivial -> plain jnp, no extra kernel launch.
    sel = jnp.stack([minmin_idx, maxmax_idx, minmin_idx1, maxmax_idx1])  # (4,)
    p_sel = jnp.take(patches, sel, axis=2)                      # (C, wsq, 4) f32
    p_rows = jnp.transpose(p_sel, (2, 0, 1)).reshape(4 * C, wsq)
    y_rows = p_rows @ M_y_T                                     # (4*C, wsq)

    def pick(s):
        # index_select(1 patch) -> reshape -> Fold((ws,ws), kernel=(ws,ws))
        # collapses to one patch of shape (level_N*C, ws, ws).
        return y_rows[s * C:(s + 1) * C].reshape(level_N * C, ws, ws)

    return pick(0), pick(1), pick(2), pick(3)


if __name__ == "__main__":
    key = jax.random.PRNGKey(0)
    C, H, W = 3, 16, 16                                         # small demo shapes
    x = jax.random.normal(key, (C, H, W), dtype=jnp.float32)
    ws, stride, output, grade_N = 8, 4, 16, 6

    outs = dct_base_rec_forward(x, window_size=ws, stride=stride, output=output,
                                grade_N=grade_N, level_fliter=(0,))
    outs = jax.block_until_ready(outs)
    assert all(o.shape == (C, ws, ws) for o in outs)

    # ---------------- numerical reference check (numpy) ----------------------
    D = dct_mat(ws)
    gsum = combined_grade_weights(ws, grade_N)
    nH = (H - ws) // stride + 1
    nW = (W - ws) // stride + 1
    L = nH * nW
    HI = (np.arange(ws)[:, None, None, None]
          + np.arange(nH)[None, None, :, None] * stride)
    WI = (np.arange(ws)[None, :, None, None]
          + np.arange(nW)[None, None, None, :] * stride)
    xnp = np.asarray(x, dtype=np.float64)
    P_ref = xnp[:, HI, WI].reshape(C, ws * ws, L)               # columns = vec(patch)

    # grade/ordering reference mirrors the kernel's bf16 inputs (ranking only)
    def as_bf16(a):
        return np.asarray(jnp.asarray(a, jnp.float32).astype(jnp.bfloat16)
                          .astype(jnp.float32), dtype=np.float64)

    T_bf = as_bf16(np.kron(D, D))
    xd_ref = np.einsum('km,cml->ckl', T_bf, as_bf16(P_ref))
    grade_ref = np.einsum('ckl,k->l', np.log(np.abs(xd_ref) + 1.0), gsum)
    order = np.argsort(grade_ref)
    sel_ref = [order[0], order[-1], order[1], order[-2]]

    # all-pass level filter (band [0, 2*ws]) => each output equals the selected
    # input patch up to DCT round-trip error.
    P_img = P_ref.reshape(C, ws, ws, L)
    for o, s in zip(outs, sel_ref):
        np.testing.assert_allclose(np.asarray(o),
                                   P_img[..., s].astype(np.float32),
                                   rtol=1e-3, atol=1e-3)
    print("KERNEL_OK")
</pallas_src>

<mosaic_0001>
module attributes {stable_mosaic.version = 11 : i64} {
  func.func @kernel(%arg0: i32, %arg1: memref<64x384xbf16, #tpu.memory_space<vmem>>, %arg2: memref<64x64xbf16, #tpu.memory_space<vmem>>, %arg3: memref<64x1xf32, #tpu.memory_space<vmem>>, %arg4: memref<1x128xf32, #tpu.memory_space<vmem>>) attributes {dimension_semantics = [#tpu.dimension_semantics<parallel>], iteration_bounds = array<i64: 1>, scalar_prefetch = 0 : i64, scratch_operands = 0 : i64, tpu.core_type = #tpu.core_type<tc>, window_params = [{transform_indices = @transform_0, window_bounds = array<i64: 64, 384>}, {pipeline_mode = #tpu.pipeline_mode<synchronous>, transform_indices = @transform_1, window_bounds = array<i64: 64, 64>}, {pipeline_mode = #tpu.pipeline_mode<synchronous>, transform_indices = @transform_2, window_bounds = array<i64: 64, 1>}, {transform_indices = @transform_3, window_bounds = array<i64: 1, 128>}]} {
    %c0 = arith.constant 0 : index
    %c0_0 = arith.constant 0 : index
    %0 = vector.load %arg2[%c0, %c0_0] : memref<64x64xbf16, #tpu.memory_space<vmem>>, vector<64x64xbf16>
    %c0_1 = arith.constant 0 : index
    %c0_2 = arith.constant 0 : index
    %1 = vector.load %arg1[%c0_1, %c0_2] : memref<64x384xbf16, #tpu.memory_space<vmem>>, vector<64x384xbf16>
    %cst = arith.constant dense<0.000000e+00> : vector<64x384xf32>
    %2 = tpu.matmul %0, %1, %cst {dimension_numbers = #tpu.dot_dimension_numbers<[1], [0], [0], [1], [0, 0, 1, 1], [], []>} : vector<64x64xbf16>, vector<64x384xbf16>, vector<64x384xf32> -> vector<64x384xf32>
    %3 = math.absf %2 : vector<64x384xf32>
    %cst_3 = arith.constant 1.000000e+00 : f32
    %4 = vector.broadcast %cst_3 : f32 to vector<64x384xf32>
    %5 = arith.addf %3, %4 : vector<64x384xf32>
    %6 = math.log %5 : vector<64x384xf32>
    %c0_4 = arith.constant 0 : index
    %c0_5 = arith.constant 0 : index
    %7 = vector.load %arg3[%c0_4, %c0_5] : memref<64x1xf32, #tpu.memory_space<vmem>>, vector<64x1xf32>
    %8 = vector.broadcast %7 : vector<64x1xf32> to vector<64x384xf32>
    %9 = arith.mulf %6, %8 : vector<64x384xf32>
    %cst_6 = arith.constant dense<0.000000e+00> : vector<384xf32>
    %10 = vector.multi_reduction <add>, %9, %cst_6 [0] : vector<64x384xf32> to vector<384xf32>
    %11 = vector.shape_cast %10 : vector<384xf32> to vector<1x384xf32>
    %12 = vector.extract_strided_slice %11 {offsets = [0, 0], sizes = [1, 128], strides = [1, 1]} : vector<1x384xf32> to vector<1x128xf32>
    %13 = vector.extract_strided_slice %11 {offsets = [0, 128], sizes = [1, 128], strides = [1, 1]} : vector<1x384xf32> to vector<1x128xf32>
    %14 = arith.addf %12, %13 : vector<1x128xf32>
    %15 = vector.extract_strided_slice %11 {offsets = [0, 256], sizes = [1, 128], strides = [1, 1]} : vector<1x384xf32> to vector<1x128xf32>
    %16 = arith.addf %14, %15 : vector<1x128xf32>
    %c0_7 = arith.constant 0 : index
    %c0_8 = arith.constant 0 : index
    %17 = vector.load %arg4[%c0_7, %c0_8] : memref<1x128xf32, #tpu.memory_space<vmem>>, vector<1x128xf32>
    tpu.vector_store %arg4[%c0_7, %c0_8], %16 {strides = array<i32>} : memref<1x128xf32, #tpu.memory_space<vmem>>, vector<1x128xf32>,
    return
  }
  func.func @transform_0(%arg0: i32) -> (i32, i32) {
    %c0_i32 = arith.constant 0 : i32
    %c0_i32_0 = arith.constant 0 : i32
    return %c0_i32, %arg0 : i32, i32
  }
  func.func @transform_1(%arg0: i32) -> (i32, i32) {
    %c0_i32 = arith.constant 0 : i32
    %c0_i32_0 = arith.constant 0 : i32
    %c0_i32_1 = arith.constant 0 : i32
    return %c0_i32, %c0_i32_0 : i32, i32
  }
  func.func @transform_2(%arg0: i32) -> (i32, i32) {
    %c0_i32 = arith.constant 0 : i32
    %c0_i32_0 = arith.constant 0 : i32
    %c0_i32_1 = arith.constant 0 : i32
    return %c0_i32, %c0_i32_0 : i32, i32
  }
  func.func @transform_3(%arg0: i32) -> (i32, i32) {
    %c0_i32 = arith.constant 0 : i32
    %c0_i32_0 = arith.constant 0 : i32
    return %c0_i32, %arg0 : i32, i32
  }
}

</mosaic_0001>

<bundles_post_ra>
// kernel: tpu_custom_call.1
= control target key start
LH: loop header
LB: loop body
LE: loop exit
PB: predicated region body
PF: predicated region fallthrough
CT: control target
= control target key end

     0   :  { %8 = vsyncpa [#allocation3], 0  ;;  %s805_s0 = inlined_call_operand.hbm [shape: bf16[64,384], index: 0, kind: input, shape index: {}]   ;;  %s806_s1 = inlined_call_operand.vmem [shape: bf16[64,64], index: 1, kind: input, shape index: {}]   ;;  %s807_s2 = inlined_call_operand.vmem [shape: f32[64,1], index: 2, kind: input, shape index: {}]   ;;  %s808_s3 = inlined_call_operand.hbm [shape: f32[1,128], index: 3, kind: output, shape index: {}]  }
   0x1   :  { %9 = vsyncpa [#allocation4], 0  ;;  %s14_s14 = sshll.u32 %s805_s0, 4  ;;  %s679_s15 = smov [#allocation2]   ;;  %s15_s14 = int_to_ptr.hbm [resolvable:$true] %s14_s14 }
   0x2   :  { %s16_s16 = sshll.u32 %s679_s15, 4  ;;  %s680_s17 = smov 192   ;;  %s17_s16 = int_to_ptr.vmem [resolvable:$true] %s16_s16 }
   0x3   :  { %s681_s18 = smov 12  }
   0x4   :  { %22 = dma.hbm_to_vmem [thread:$0]  %s15_s14, 1536, %s17_s16, [#allocation3], %s680_s17, %s680_s17, %s681_s18  }
   0x5   :  { %675 = dma.done.wait [#allocation3], 1536  }
   0x6   :  { %676 = vsyncadd [#allocation3], 4294965760  ;;  %v521_v0 = vld [vmem:[#allocation2 + $0x48] sm:$0xf]  ;;  %v557_v1 = vld [vmem:[#allocation2 + $0x50] sm:$0xf0] }
   0x7   :  { %v556_v2 = vld [vmem:[#allocation2 + $0x4c] sm:$0xf]  ;;  %v522_v3 = vor.u32 %v557_v1, %v521_v0  ;;  %v523_v4 = vld [vmem:[#allocation2 + $0x54] sm:$0xf0]  ;;  %v529_v5 = vld [vmem:[#allocation2 + $0x50] sm:$0xf] }
   0x8   :  { %v558_v6 = vld [vmem:[#allocation2 + $0x58] sm:$0xf0]  ;;  %v526_v7 = vor.u32 %v556_v2, %v523_v4  ;;  %v509_v9 = vld [vmem:[#allocation2 + $0x30] sm:$0xf]  ;;  %v553_v11 = vld [vmem:[#allocation2 + $0x34] sm:$0xf] }
   0x9   :  { %v707_v8 = vor.u32 %v558_v6, %v529_v5  ;;  %v554_v10 = vld [vmem:[#allocation2 + $0x38] sm:$0xf0]  ;;  %157 = vmatpush.bf16.msra.mxu0 %v522_v3  ;;  %559 = vmatpush.bf16.msra.mxu3 %v522_v3  ;;  %v511_v13 = vld [vmem:[#allocation2 + $0x3c] sm:$0xf0]  ;;  %v517_v14 = vld [vmem:[#allocation2 + $0x38] sm:$0xf] }
   0xa   :  { %v510_v12 = vor.u32 %v554_v10, %v509_v9  ;;  %v555_v15 = vld [vmem:[#allocation2 + $0x40] sm:$0xf0]  ;;  %563 = vmatpush.bf16.msra.mxu1 %v526_v7  ;;  %v514_v16 = vor.u32 %v553_v11, %v511_v13  ;;  %v497_v18 = vld [vmem:[#allocation2 + $0x18] sm:$0xf]  ;;  %v550_v20 = vld [vmem:[#allocation2 + $0x1c] sm:$0xf] }
   0xb   :  { %567 = vmatpush.bf16.msra.mxu2 %v707_v8  ;;  %v710_v17 = vor.u32 %v555_v15, %v517_v14  ;;  %v551_v19 = vld [vmem:[#allocation2 + $0x20] sm:$0xf0]  ;;  %v499_v21 = vld [vmem:[#allocation2 + $0x24] sm:$0xf0]  ;;  %v505_v22 = vld [vmem:[#allocation2 + $0x20] sm:$0xf] }
   0xc   :  { %v552_v23 = vld [vmem:[#allocation2 + $0x28] sm:$0xf0]  ;;  %v498_v24 = vor.u32 %v551_v19, %v497_v18  ;;  %v485_v25 = vld [vmem:[#allocation2] sm:$0xf]  ;;  %v547_v27 = vld [vmem:[#allocation2 + $0x4] sm:$0xf]  ;;  %v502_v28 = vor.u32 %v550_v20, %v499_v21 }
   0xd   :  { %158 = vmatpush.bf16.msra.mxu0 %v510_v12  ;;  %560 = vmatpush.bf16.msra.mxu3 %v510_v12  ;;  %v548_v26 = vld [vmem:[#allocation2 + $0x8] sm:$0xf0]  ;;  %v506_v29 = vor.u32 %v552_v23, %v505_v22  ;;  %v487_v30 = vld [vmem:[#allocation2 + $0xc] sm:$0xf0]  ;;  %v493_v31 = vld [vmem:[#allocation2 + $0x8] sm:$0xf] }
   0xe   :  { %564 = vmatpush.bf16.msra.mxu1 %v514_v16  ;;  %v549_v32 = vld [vmem:[#allocation2 + $0x10] sm:$0xf0]  ;;  %v682_v33 = vmov 0   ;;  %v336_v34 = vld [vmem:[%s807_s2] sm:$0xff]  ;;  %v486_v36 = vor.u32 %v548_v26, %v485_v25  ;;  %v490_v37 = vor.u32 %v547_v27, %v487_v30  ;;  %v544_v40 = vld [vmem:[%s806_s1 + $0x8] sm:$0xff]  ;;  %vm140_vm0 = vcmask 523264  }
   0xf   :  { %568 = vmatpush.bf16.msra.mxu2 %v710_v17  ;;  %576 = vset.pattern.permute.xlu0 %v682_v33  ;;  %v338_v35 = vld [vmem:[%s807_s2 + $0x10] sm:$0xff]  ;;  %v494_v38 = vor.u32 %v549_v32, %v493_v31  ;;  %v543_v39 = vld [vmem:[%s806_s1] sm:$0xff]  ;;  %v337_v41 = vld [vmem:[%s807_s2 + $0x8] sm:$0xff]  ;;  %s457_s17 = sshll.u32 %s808_s3, 4  ;;  %s458_s17 = int_to_ptr.hbm [resolvable:$true] %s457_s17 }
  0x10   :  { %577 = vset.pattern.permute.xlu1 %v682_v33  ;;  %346 = vperm.xlu0 %576, %v336_v34   ;;  %v339_v42 = vld [vmem:[%s807_s2 + $0x18] sm:$0xff]  ;;  %v340_v43 = vld [vmem:[%s807_s2 + $0x20] sm:$0xff]  ;;  %v342_v44 = vld [vmem:[%s807_s2 + $0x30] sm:$0xff] }
  0x11   :  { %356 = vperm.xlu1 %577, %v338_v35   ;;  %159 = vmatpush.bf16.msra.mxu0 %v498_v24  ;;  %v343_v45 = vld [vmem:[%s807_s2 + $0x38] sm:$0xff]  ;;  %v341_v46 = vld [vmem:[%s807_s2 + $0x28] sm:$0xff]  ;;  %v545_v47 = vld [vmem:[%s806_s1 + $0x10] sm:$0xff] }
  0x12   :  { %561 = vmatpush.bf16.msra.mxu3 %v498_v24  ;;  %565 = vmatpush.bf16.msra.mxu1 %v502_v28  ;;  %v546_v48 = vld [vmem:[%s806_s1 + $0x18] sm:$0xff]  ;;  %s683_s1 = smov [#allocation5]  }
  0x13   :  { %569 = vmatpush.bf16.msra.mxu2 %v506_v29  ;;  %578 = vset.pattern.permute.xlu2 %v682_v33  ;;  %s455_s14 = sshll.u32 %s683_s1, 4  ;;  %s456_s14 = int_to_ptr.vmem [resolvable:$true] %s455_s14 }
  0x14   :  { %366 = vperm.xlu2 %578, %v340_v43  }
  0x15   :  { %160 = vmatpush.bf16.msra.mxu0 %v486_v36 }
  0x16   :  { %562 = vmatpush.bf16.msra.mxu3 %v486_v36  ;;  %566 = vmatpush.bf16.msra.mxu1 %v490_v37 }
  0x17   :  { %570 = vmatpush.bf16.msra.mxu2 %v494_v38 }
  0x18   :  { %531 = vmatmul.msk.bf16.vlgmr.msra.gmra.mxu0 %vm140_vm0, %v543_v39  ;;  %351 = vperm.xlu0 %576, %v337_v41  }
  0x19   :  { %186 = vmatpush.bf16.msrb.mxu0 %v526_v7  ;;  %532 = vmatmul.msk.bf16.vlgmr.msra.gmra.mxu3 %vm140_vm0, %v544_v40 }
  0x1a   :  { %536 = vmatmul.msk.bf16.vlgmr.msra.gmra.mxu1 %vm140_vm0, %v544_v40  ;;  %540 = vmatmul.msk.bf16.vlgmr.msra.gmra.mxu2 %vm140_vm0, %v544_v40 }
  0x1b   :  { %361 = vperm.xlu1 %577, %v339_v42  }
  0x1c   :  { %371 = vperm.xlu2 %578, %v341_v46  }
  0x1d   :  { %187 = vmatpush.bf16.msrb.mxu0 %v514_v16 }
  0x20   :  { %376 = vperm.xlu0 %576, %v342_v44  }
  0x21   :  { %188 = vmatpush.bf16.msrb.mxu0 %v502_v28 }
  0x23   :  { %381 = vperm.xlu1 %577, %v343_v45  }
  0x25   :  { %189 = vmatpush.bf16.msrb.mxu0 %v490_v37 }
  0x28   :  { %535 = vmatmul.msk.bf16.vlgmr.msrb.gmra.mxu0 %vm140_vm0, %v543_v39 }
  0x29   :  { %215 = vmatpush.bf16.msra.mxu0 %v707_v8  ;;  %533 = vmatmul.msk.bf16.gmra.mxu3 %vm140_vm0, %v545_v47 }
  0x2a   :  { %537 = vmatmul.msk.bf16.gmra.mxu1 %vm140_vm0, %v545_v47  ;;  %541 = vmatmul.msk.bf16.gmra.mxu2 %vm140_vm0, %v545_v47 }
  0x2d   :  { %216 = vmatpush.bf16.msra.mxu0 %v710_v17 }
  0x31   :  { %217 = vmatpush.bf16.msra.mxu0 %v506_v29 }
  0x35   :  { %218 = vmatpush.bf16.msra.mxu0 %v494_v38 }
  0x38   :  { %539 = vmatmul.msk.bf16.vlgmr.msra.gmra.mxu0 %vm140_vm0, %v543_v39 }
  0x39   :  { %534 = vmatmul.msk.bf16.gmra.mxu3 %vm140_vm0, %v546_v48 }
  0x3a   :  { %538 = vmatmul.msk.bf16.gmra.mxu1 %vm140_vm0, %v546_v48  ;;  %542 = vmatmul.msk.bf16.gmra.mxu2 %vm140_vm0, %v546_v48 }
  0x6e   :  { %v774_v46 = vpop.permute.xlu2 %366 }
  0x82   :  { %v767_v13 = vpop.permute.xlu0 %346 }
  0x83   :  { %v769_v15 = vpop.permute.xlu1 %356 }
  0x95   :  { %v162_v49 = vpop.f32.mrf.mxu0 }
  0x96   :  { %v240_v61 = vand.u32 2147483647, %v162_v49  ;;  %v777_v49 = vpop.permute.xlu0 %351 }
  0x97   :  { %v196_v50 = vpop.f32.mrf.mxu1 }
  0x98   :  { %v247_v57 = vand.u32 2147483647, %v196_v50  ;;  %v264_v2 = vadd.f32 1.0, %v240_v61 }
  0x9a   :  { %v271_v63 = vadd.f32 1.0, %v247_v57 }
  0x9c   :  { %v167_v51 = vpop.f32.mrf.mxu3  ;;  %579 = vlog2.f32 %v271_v63 }
  0x9d   :  { %v225_v52 = vpop.f32.mrf.mxu2  ;;  %v164_v53 = vpop.f32.mrf.mxu0  ;;  %v246_v0 = vand.u32 2147483647, %v167_v51 }
  0x9e   :  { %v243_v3 = vand.u32 2147483647, %v164_v53  ;;  %v248_v18 = vand.u32 2147483647, %v225_v52  ;;  %v780_v51 = vpop.permute.xlu1 %361 }
  0x9f   :  { %v198_v54 = vpop.f32.mrf.mxu1  ;;  %v270_v7 = vadd.f32 1.0, %v246_v0 }
  0xa0   :  { %v250_v62 = vand.u32 2147483647, %v198_v54  ;;  %v267_v12 = vadd.f32 1.0, %v243_v3  ;;  %v272_v32 = vadd.f32 1.0, %v248_v18 }
  0xa2   :  { %v274_v5 = vadd.f32 1.0, %v250_v62  ;;  %v580_v20 = vpop.eup %579 }
  0xa3   :  { %v303_v31 = vmul.f32 0.6931472, %v580_v20 }
  0xa4   :  { %v169_v55 = vpop.f32.mrf.mxu3 }
  0xa5   :  { %v763_v56 = vpop.f32.mrf.mxu2  ;;  %v191_v58 = vpop.f32.mrf.mxu0  ;;  %v249_v14 = vand.u32 2147483647, %v169_v55  ;;  %v391_v48 = vmul.f32 %v769_v15, %v303_v31 }
  0xa6   :  { %v241_v59 = vand.u32 2147483647, %v191_v58  ;;  %v251_v41 = vand.u32 2147483647, %v763_v56 }
  0xa7   :  { %v201_v60 = vpop.f32.mrf.mxu1  ;;  %v273_v24 = vadd.f32 1.0, %v249_v14 }
  0xa8   :  { %v265_v1 = vadd.f32 1.0, %v241_v59  ;;  %v253_v9 = vand.u32 2147483647, %v201_v60  ;;  %v275_v59 = vadd.f32 1.0, %v251_v41 }
  0xaa   :  { %581 = vlog2.f32 %v265_v1  ;;  %v277_v19 = vadd.f32 1.0, %v253_v9 }
  0xab   :  { %583 = vlog2.f32 %v264_v2 }
  0xac   :  { %v172_v4 = vpop.f32.mrf.mxu3  ;;  %585 = vlog2.f32 %v274_v5 }
  0xad   :  { %v765_v6 = vpop.f32.mrf.mxu2  ;;  %v193_v8 = vpop.f32.mrf.mxu0  ;;  %587 = vlog2.f32 %v270_v7  ;;  %v252_v21 = vand.u32 2147483647, %v172_v4 }
  0xae   :  { %v244_v10 = vand.u32 2147483647, %v193_v8  ;;  %v254_v50 = vand.u32 2147483647, %v765_v6 }
  0xaf   :  { %v203_v11 = vpop.f32.mrf.mxu1  ;;  %v276_v37 = vadd.f32 1.0, %v252_v21 }
  0xb0   :  { %v268_v16 = vadd.f32 1.0, %v244_v10  ;;  %v256_v17 = vand.u32 2147483647, %v203_v11  ;;  %v582_v23 = vpop.eup %581  ;;  %v278_v3 = vadd.f32 1.0, %v254_v50 }
  0xb1   :  { %v584_v27 = vpop.eup %583  ;;  %v291_v36 = vmul.f32 0.6931472, %v582_v23 }
  0xb2   :  { %589 = vlog2.f32 %v268_v16  ;;  %v280_v28 = vadd.f32 1.0, %v256_v17  ;;  %v586_v30 = vpop.eup %585  ;;  %v289_v40 = vmul.f32 0.6931472, %v584_v27 }
  0xb3   :  { %591 = vlog2.f32 %v267_v12  ;;  %v588_v35 = vpop.eup %587  ;;  %v309_v44 = vmul.f32 0.6931472, %v586_v30  ;;  %v385_v54 = vmul.f32 %v767_v13, %v291_v36 }
  0xb4   :  { %v174_v22 = vpop.f32.mrf.mxu3  ;;  %593 = vlog2.f32 %v277_v19  ;;  %v301_v53 = vmul.f32 0.6931472, %v588_v35  ;;  %v384_v18 = vmul.f32 %v767_v13, %v289_v40 }
  0xb5   :  { %v255_v25 = vand.u32 2147483647, %v174_v22  ;;  %v771_v26 = vpop.f32.mrf.mxu2  ;;  %v220_v29 = vpop.f32.mrf.mxu0  ;;  %595 = vlog2.f32 %v273_v24  ;;  %v394_v62 = vmul.f32 %v780_v51, %v309_v44 }
  0xb6   :  { %v242_v34 = vand.u32 2147483647, %v220_v29  ;;  %597 = vlog2.f32 %v280_v28  ;;  %v257_v0 = vand.u32 2147483647, %v771_v26  ;;  %v390_v26 = vmul.f32 %v769_v15, %v301_v53  ;;  %v790_v29 = vpop.permute.xlu2 %371 }
  0xb7   :  { %v206_v33 = vpop.f32.mrf.mxu1  ;;  %v279_v42 = vadd.f32 1.0, %v255_v25  ;;  %599 = vlog2.f32 %v272_v32 }
  0xb8   :  { %v259_v38 = vand.u32 2147483647, %v206_v33  ;;  %v590_v39 = vpop.eup %589  ;;  %v266_v47 = vadd.f32 1.0, %v242_v34  ;;  %601 = vlog2.f32 %v276_v37  ;;  %v281_v19 = vadd.f32 1.0, %v257_v0 }
  0xb9   :  { %v592_v43 = vpop.eup %591  ;;  %v297_v45 = vmul.f32 0.6931472, %v590_v39  ;;  %603 = vlog2.f32 %v279_v42 }
  0xba   :  { %v283_v52 = vadd.f32 1.0, %v259_v38  ;;  %v594_v57 = vpop.eup %593  ;;  %v295_v58 = vmul.f32 0.6931472, %v592_v43  ;;  %605 = vlog2.f32 %v266_v47 }
  0xbb   :  { %v388_v55 = vmul.f32 %v777_v49, %v297_v45  ;;  %v596_v2 = vpop.eup %595  ;;  %v315_v8 = vmul.f32 0.6931472, %v594_v57 }
  0xbc   :  { %v177_v56 = vpop.f32.mrf.mxu3  ;;  %607 = vlog2.f32 %v283_v52  ;;  %v598_v7 = vpop.eup %597  ;;  %v387_v14 = vmul.f32 %v777_v49, %v295_v58  ;;  %v307_v22 = vmul.f32 0.6931472, %v596_v2 }
  0xbd   :  { %v258_v60 = vand.u32 2147483647, %v177_v56  ;;  %v235_v61 = vpop.f32.mrf.mxu2  ;;  %v421_v63 = vadd.f32 %v388_v55, %v385_v54  ;;  %v222_v1 = vpop.f32.mrf.mxu0  ;;  %v321_v23 = vmul.f32 0.6931472, %v598_v7  ;;  %v397_v27 = vmul.f32 %v774_v46, %v315_v8 }
  0xbe   :  { %v245_v6 = vand.u32 2147483647, %v222_v1  ;;  %v260_v10 = vand.u32 2147483647, %v235_v61  ;;  %v600_v12 = vpop.eup %599  ;;  %v408_v32 = vadd.f32 %v387_v14, %v384_v18  ;;  %v393_v39 = vmul.f32 %v780_v51, %v307_v22  ;;  %v382_v7 = vpop.permute.xlu1 %381 }
  0xbf   :  { %v282_v4 = vadd.f32 1.0, %v258_v60  ;;  %v208_v5 = vpop.f32.mrf.mxu1  ;;  %v422_v9 = vadd.f32 %v421_v63, %v391_v48  ;;  %v602_v17 = vpop.eup %601  ;;  %v400_v41 = vmul.f32 %v790_v29, %v321_v23  ;;  %v305_v50 = vmul.f32 0.6931472, %v600_v12 }
  0xc0   :  { %v262_v11 = vand.u32 2147483647, %v208_v5  ;;  %v269_v16 = vadd.f32 1.0, %v245_v6  ;;  %v604_v21 = vpop.eup %603  ;;  %v284_v28 = vadd.f32 1.0, %v260_v10  ;;  %v313_v33 = vmul.f32 0.6931472, %v602_v17 }
  0xc1   :  { %609 = vlog2.f32 %v282_v4  ;;  %v423_v20 = vadd.f32 %v422_v9, %v394_v62  ;;  %v606_v25 = vpop.eup %605  ;;  %v319_v40 = vmul.f32 0.6931472, %v604_v21  ;;  %v409_v52 = vadd.f32 %v408_v32, %v390_v26  ;;  %v377_v62 = vpop.permute.xlu0 %376 }
  0xc2   :  { %611 = vlog2.f32 %v275_v59  ;;  %v286_v24 = vadd.f32 1.0, %v262_v11  ;;  %v608_v31 = vpop.eup %607  ;;  %v293_v45 = vmul.f32 0.6931472, %v606_v25  ;;  %v396_v53 = vmul.f32 %v774_v46, %v313_v33 }
  0xc3   :  { %613 = vlog2.f32 %v269_v16  ;;  %v424_v36 = vadd.f32 %v423_v20, %v397_v27  ;;  %v327_v44 = vmul.f32 0.6931472, %v608_v31  ;;  %v410_v60 = vadd.f32 %v409_v52, %v393_v39 }
  0xc4   :  { %615 = vlog2.f32 %v278_v3  ;;  %v179_v30 = vpop.f32.mrf.mxu3  ;;  %v399_v61 = vmul.f32 %v790_v29, %v319_v40  ;;  %v386_v0 = vmul.f32 %v767_v13, %v293_v45  ;;  %v392_v4 = vmul.f32 %v769_v15, %v305_v50 }
  0xc5   :  { %617 = vlog2.f32 %v286_v24  ;;  %v261_v34 = vand.u32 2147483647, %v179_v30  ;;  %v237_v35 = vpop.f32.mrf.mxu2  ;;  %v425_v56 = vadd.f32 %v424_v36, %v400_v41  ;;  %v403_v3 = vmul.f32 %v377_v62, %v327_v44 }
  0xc6   :  { %619 = vlog2.f32 %v281_v19  ;;  %v263_v37 = vand.u32 2147483647, %v237_v35  ;;  %v411_v6 = vadd.f32 %v410_v60, %v396_v53 }
  0xc7   :  { %v610_v38 = vpop.eup %609  ;;  %v285_v42 = vadd.f32 1.0, %v261_v34  ;;  %621 = vlog2.f32 %v284_v28  ;;  %v426_v11 = vadd.f32 %v425_v56, %v403_v3 }
  0xc8   :  { %v612_v43 = vpop.eup %611  ;;  %v287_v47 = vadd.f32 1.0, %v263_v37  ;;  %v325_v55 = vmul.f32 0.6931472, %v610_v38  ;;  %v412_v18 = vadd.f32 %v411_v6, %v399_v61 }
  0xc9   :  { %v614_v48 = vpop.eup %613  ;;  %623 = vlog2.f32 %v285_v42  ;;  %v311_v59 = vmul.f32 0.6931472, %v612_v43 }
  0xca   :  { %v616_v54 = vpop.eup %615  ;;  %v299_v57 = vmul.f32 0.6931472, %v614_v48  ;;  %625 = vlog2.f32 %v287_v47  ;;  %v402_v10 = vmul.f32 %v377_v62, %v325_v55 }
  0xcb   :  { %v618_v58 = vpop.eup %617  ;;  %v317_v5 = vmul.f32 0.6931472, %v616_v54  ;;  %v395_v16 = vmul.f32 %v780_v51, %v311_v59 }
  0xcc   :  { %v620_v63 = vpop.eup %619  ;;  %v333_v1 = vmul.f32 0.6931472, %v618_v58  ;;  %v389_v2 = vmul.f32 %v777_v49, %v299_v57  ;;  %v413_v22 = vadd.f32 %v412_v18, %v402_v10 }
  0xcd   :  { %v622_v8 = vpop.eup %621  ;;  %v323_v17 = vmul.f32 0.6931472, %v620_v63  ;;  %v398_v21 = vmul.f32 %v774_v46, %v317_v5 }
  0xce   :  { %v434_v9 = vadd.f32 %v389_v2, %v386_v0  ;;  %v406_v12 = vmul.f32 %v382_v7, %v333_v1  ;;  %v329_v15 = vmul.f32 0.6931472, %v622_v8 }
  0xcf   :  { %v624_v14 = vpop.eup %623  ;;  %v401_v26 = vmul.f32 %v790_v29, %v323_v17 }
  0xd0   :  { %v435_v13 = vadd.f32 %v434_v9, %v392_v4  ;;  %v331_v19 = vmul.f32 0.6931472, %v624_v14  ;;  %v427_v20 = vadd.f32 %v426_v11, %v406_v12  ;;  %v626_v49 = vpop.eup %625  ;;  %v404_v51 = vmul.f32 %v377_v62, %v329_v15 }
  0xd1   :  { %v335_v28 = vmul.f32 0.6931472, %v626_v49 }
  0xd2   :  { %v436_v23 = vadd.f32 %v435_v13, %v395_v16  ;;  %v405_v24 = vmul.f32 %v382_v7, %v331_v19  ;;  %v428_v25 = vrot.slane %v427_v20, 4 }
  0xd3   :  { %v407_v35 = vmul.f32 %v382_v7, %v335_v28 }
  0xd4   :  { %v437_v27 = vadd.f32 %v436_v23, %v398_v21  ;;  %v414_v30 = vadd.f32 %v413_v22, %v405_v24  ;;  %v429_v31 = vadd.f32 %v428_v25, %v427_v20 }
  0xd6   :  { %v438_v32 = vadd.f32 %v437_v27, %v401_v26  ;;  %v415_v33 = vrot.slane %v414_v30, 4  ;;  %v430_v37 = vrot.slane %v429_v31, 2 }
  0xd8   :  { %v439_v34 = vadd.f32 %v438_v32, %v404_v51  ;;  %v416_v36 = vadd.f32 %v415_v33, %v414_v30  ;;  %v431_v40 = vadd.f32 %v430_v37, %v429_v31 }
  0xda   :  { %v417_v38 = vrot.slane %v416_v36, 2  ;;  %v440_v46 = vadd.f32 %v439_v34, %v407_v35  ;;  %v432_v44 = vrot.slane %v431_v40, 1 }
  0xdc   :  { %v418_v39 = vadd.f32 %v417_v38, %v416_v36  ;;  %v441_v41 = vrot.slane %v440_v46, 4  ;;  %v433_v48 = vadd.f32 %v432_v44, %v431_v40 }
  0xde   :  { %v419_v42 = vrot.slane %v418_v39, 1  ;;  %v442_v43 = vadd.f32 %v441_v41, %v440_v46 }
  0xe0   :  { %v443_v29 = vrot.slane %v442_v43, 2  ;;  %v420_v47 = vadd.f32 %v419_v42, %v418_v39 }
  0xe2   :  { %v444_v45 = vadd.f32 %v443_v29, %v442_v43  ;;  %v447_v53 = vadd.f32 %v433_v48, %v420_v47 }
  0xe4   :  { %v445_v50 = vrot.slane %v444_v45, 1 }
  0xe6   :  { %v446_v52 = vadd.f32 %v445_v50, %v444_v45 }
  0xe8   :  { %v448_v54 = vadd.f32 %v447_v53, %v446_v52 }
  0xea   :  { %449 = vst [vmem:[#allocation5] sm:$0x1] %v448_v54 }
  0xeb   :  { %460 = dma.vmem_to_hbm [thread:$0]  %s456_s14, 16, %s458_s17, [#allocation4]  }
  0xec   :  { %677 = dma.done.wait [#allocation4], 16  }
  0xed   :  { %678 = vsyncadd [#allocation4], 4294967280 }
  0xee   :  { %465 = vsyncpa [#allocation3], 1 }
  0xef   :  { %466 = vsyncpa [#allocation4], 1 }

</bundles_post_ra>
